<compile_context>
chip_gen: v7x
topology: tpu7x:2x2x1
jax: 0.10.0
libtpu: 0.0.40
codegen_flags: <defaults>
</compile_context>

<pallas_src>
import math

import numpy as np
import jax
import jax.numpy as jnp
from jax import lax
from jax.experimental import pallas as pl
from jax.experimental.pallas import tpu as pltpu

N_QUBITS = 4
DEPTH = 1
KERNEL_SIZE = 2
TP_MAX = 2048          # max patches (lanes) per grid step
SUB = 256              # lane sub-column processed per inner-loop iteration
INV_SQRT2 = 0.7071067811865476

# Sublane layout of the un-entangled (product) state:
#   row r  <->  amplitude a_{QROW[r]}(BROW[r])        (qubit, basis bit)
# chosen so that
#   * the RY basis-flip partner is a symmetric roll by 4 sublanes, and
#   * S[r] * roll(S, 2)[r] enumerates all 8 two-qubit pair products
#     (qubit pair {0,1} on even rows, {2,3} on odd rows).
QROW = np.array([0, 2, 1, 3, 0, 2, 1, 3])
BROW = np.array([0, 0, 0, 0, 1, 1, 1, 1])


# --------------------------------- kernel ------------------------------------
def quanv_kernel(ang_ref, m_hi_ref, m_lo_ref, z_ref, out_ref):
    """4-qubit QNode forward for a block of patches.

    ang_ref : (nsub, 8*n_slots, sub) f32  signed half-angles, one 8-row group
                                          per encoding gate slot (see wrapper)
    m_hi/m_lo : (32, 32) bf16             entangler (CRZ ring + trainable RYs)
                                          as a real matrix on [re;im], split
                                          into bf16 hi/lo for f32-accurate MXU
    z_ref   : (8, 16) bf16                <Z_q> sign matrix (rows 4..7 = 0)
    out_ref : (nsub, 8, sub) f32          rows 0..3 = <Z_0..3>
    """
    f32, bf16 = jnp.float32, jnp.bfloat16
    nsub = ang_ref.shape[0]
    n_slots = ang_ref.shape[1] // 8
    sub = ang_ref.shape[2]

    m_hi = m_hi_ref[...]
    m_lo = m_lo_ref[...]
    zmat = z_ref[...]

    def body(j, carry):
        ang = ang_ref[j]                              # (8*n_slots, sub)
        # Two EUP passes for the whole slot block.  The per-row sign of the
        # basis bit is baked into `ang`, so sin() already carries it and cos()
        # is unaffected -> no per-slot sign multiplies or broadcasts.
        c_all = jnp.cos(ang)
        s_all = jnp.sin(ang)

        # ---- data-encoding layer on the 4 *unentangled* qubits --------------
        s_re = jnp.full((8, sub), INV_SQRT2, f32)     # H|0> on every qubit
        s_im = jnp.zeros((8, sub), f32)
        for i in range(n_slots):
            c = c_all[8 * i:8 * i + 8, :]
            sn = s_all[8 * i:8 * i + 8, :]
            if i % 2 == 0:                            # RZ: diag(e^-it/2, e^+it/2)
                s_re, s_im = s_re * c - s_im * sn, s_im * c + s_re * sn
            else:                                     # RY: mixes the two basis amps
                # basis-flip partner: shift-4 roll is direction-agnostic -> XLU
                p_re = pltpu.roll(s_re, 4, 0)
                p_im = pltpu.roll(s_im, 4, 0)
                s_re, s_im = c * s_re + sn * p_re, c * s_im + sn * p_im

        # ---- expand product state -> 16 joint amplitudes --------------------
        # pair products of qubits {0,1} (even rows) / {2,3} (odd rows)
        # (jnp.roll used where the shift direction matters for the row order)
        t_re = jnp.roll(s_re, 2, axis=0)
        t_im = jnp.roll(s_im, 2, axis=0)
        w_re = s_re * t_re - s_im * t_im
        w_im = s_re * t_im + s_im * t_re
        # all 16 four-qubit products (scrambled order, absorbed into M below)
        u_re = jnp.roll(w_re, 1, axis=0)
        u_im = jnp.roll(w_im, 1, axis=0)
        v_re = jnp.roll(w_re, 3, axis=0)
        v_im = jnp.roll(w_im, 3, axis=0)
        amp = jnp.concatenate(
            [w_re * u_re - w_im * u_im, w_re * v_re - w_im * v_im,   # Re, 16 rows
             w_re * u_im + w_im * u_re, w_re * v_im + w_im * v_re],  # Im, 16 rows
            axis=0)                                                   # (32, sub)

        # ---- weight-only entangler: ONE real 32x32 matrix on the idle MXU ---
        # bf16 hi/lo split keeps ~f32 accuracy regardless of the backend's
        # f32-matmul pass count (bf16 x bf16 -> f32 accumulate is exact).
        a_hi = amp.astype(bf16)
        a_lo = (amp - a_hi.astype(f32)).astype(bf16)
        psi = (jnp.dot(m_hi, a_hi, preferred_element_type=f32)
               + jnp.dot(m_hi, a_lo, preferred_element_type=f32)
               + jnp.dot(m_lo, a_hi, preferred_element_type=f32))     # (32, sub)

        # ---- probabilities and <Z_q> readout (second tiny MXU matmul) -------
        prob = psi[0:16, :] * psi[0:16, :] + psi[16:32, :] * psi[16:32, :]
        p_hi = prob.astype(bf16)
        p_lo = (prob - p_hi.astype(f32)).astype(bf16)
        out_ref[j] = (jnp.dot(zmat, p_hi, preferred_element_type=f32)
                      + jnp.dot(zmat, p_lo, preferred_element_type=f32))
        return carry

    lax.fori_loop(0, nsub, body, 0)


# ------------------------------ wrapper helpers --------------------------------
def _round_up(x, m):
    return (x + m - 1) // m * m


def _num_tensorcores():
    """Best-effort TensorCore count (v5e/v6e -> 1, v7x/megacore -> 2)."""
    try:
        info = pltpu.get_tpu_info()
        for name in ("num_cores", "core_count", "num_tensorcores",
                     "tensorcore_count", "cores_per_chip"):
            v = getattr(info, name, None)
            if isinstance(v, int) and v > 0:
                return v
    except Exception:
        pass
    try:
        kind = jax.devices()[0].device_kind.lower()
        if any(t in kind for t in ("v4", "v5p", "v7", "tpu7")):
            return 2
    except Exception:
        pass
    return 1


def _amp_perm():
    """Basis index held by each row of the kernel's scrambled amplitude order."""
    w_pairs = []
    for r in range(8):
        r2 = (r - 2) % 8
        w_pairs.append({(int(QROW[r]), int(BROW[r])),
                        (int(QROW[r2]), int(BROW[r2]))})
    perm = []
    for shift in (1, 3):                      # the two stage-2 roll shifts
        for r in range(8):
            qb = {}
            for q, b in (w_pairs[r] | w_pairs[(r - shift) % 8]):
                qb[q] = b
            assert len(qb) == N_QUBITS        # every qubit exactly once
            perm.append(sum(qb[q] << (N_QUBITS - 1 - q) for q in range(N_QUBITS)))
    assert sorted(perm) == list(range(2 ** N_QUBITS))
    return np.array(perm)


def _entangler_matrices(weights):
    """Fold CRZ ring + trainable RYs (all depths) into one real 32x32 matrix."""
    w = weights.astype(jnp.float32).reshape(-1, 2 * N_QUBITS)
    n_states = 2 ** N_QUBITS
    bits_np = ((np.arange(n_states)[:, None]
                >> np.arange(N_QUBITS - 1, -1, -1)[None, :]) & 1)
    # CRZ ring phase coefficients: b_i * (2*b_{(i+1)%4} - 1)
    coeff = jnp.asarray(bits_np * (2 * np.roll(bits_np, -1, axis=1) - 1),
                        jnp.float32)                         # (16, 4)
    u_re = jnp.eye(n_states, dtype=jnp.float32)
    u_im = jnp.zeros((n_states, n_states), jnp.float32)
    for d in range(w.shape[0]):
        phi = 0.5 * (coeff @ w[d, :N_QUBITS])                # (16,)
        dc, ds = jnp.cos(phi), jnp.sin(phi)
        du_re = dc[:, None] * u_re - ds[:, None] * u_im      # D @ U
        du_im = dc[:, None] * u_im + ds[:, None] * u_re
        r = jnp.ones((1, 1), jnp.float32)                    # RY_0 x RY_1 x RY_2 x RY_3
        for q in range(N_QUBITS):
            t = 0.5 * w[d, N_QUBITS + q]
            ct, st = jnp.cos(t), jnp.sin(t)
            rq = jnp.stack([jnp.stack([ct, -st]), jnp.stack([st, ct])])
            r = jnp.kron(r, rq)
        u_re = r @ du_re
        u_im = r @ du_im
    perm = _amp_perm()
    u_re = u_re[:, perm]                                     # absorb kernel ordering
    u_im = u_im[:, perm]
    m = jnp.concatenate(
        [jnp.concatenate([u_re, -u_im], axis=1),
         jnp.concatenate([u_im, u_re], axis=1)], axis=0)     # (32, 32)
    m_hi = m.astype(jnp.bfloat16)
    m_lo = (m - m_hi.astype(jnp.float32)).astype(jnp.bfloat16)
    zmat = np.zeros((8, n_states), np.float32)
    zmat[:N_QUBITS, :] = 1.0 - 2.0 * bits_np.T               # rows 4..7 stay zero
    return m_hi, m_lo, jnp.asarray(zmat, dtype=jnp.bfloat16)


def _encode_angles(patches, vpq, n_inputs):
    """(L, P) patch matrix -> (vpq*8, P) signed half-angle block (slot-major)."""
    slot = np.arange(vpq)
    src = QROW[None, :] * vpq + slot[:, None]                # (vpq, 8)
    valid = src < n_inputs
    sgn = np.where(BROW[None, :] > 0, 1.0, -1.0)             # b=1 -> +, b=0 -> -
    scale = (0.5 * sgn * valid).astype(np.float32).reshape(-1, 1)
    rows = np.where(valid, src, 0).reshape(-1)
    return patches[rows, :] * jnp.asarray(scale)


# --------------------------------- wrapper ------------------------------------
def quanv2d(x, weights, kernel_size=KERNEL_SIZE):
    """Pallas implementation of Quanv2d.forward.  x: (N, C, H, W) float32."""
    n, c, h, w = x.shape
    nh, nw = h // 2, w // 2                      # stride-2, size-2 window grid
    n_win = nh * nw
    L = c * kernel_size * kernel_size
    P = n * n_win
    vpq = L // N_QUBITS + 1
    R = 8 * vpq

    # im2col as one space-to-depth transpose (stride == kernel_size == 2)
    xc = x[:, :, :2 * nh, :2 * nw].astype(jnp.float32)
    xr = xc.reshape(n, c, nh, 2, nw, 2)
    patches = jnp.transpose(xr, (1, 3, 5, 0, 2, 4)).reshape(L, P)
    # TODO(synk): fuse this transpose + the gather below into the pallas_call
    # input DMA (allow_input_fusion) to save one HBM round trip.
    ang2d = _encode_angles(patches, vpq, L)                  # (R, P)

    # ---- lane tiling: big blocks, inner sub-column loop, core-aware grid ----
    sub = min(SUB, _round_up(max(P, 1), 128))
    total_chunks = -(-P // sub)
    n_cores = _num_tensorcores()
    max_nsub = max(1, TP_MAX // sub)
    steps = max(1, -(-total_chunks // max_nsub))
    if n_cores > 1 and total_chunks >= n_cores:
        steps = -(-steps // n_cores) * n_cores               # shard evenly over TCs
    nsub = -(-total_chunks // steps)
    chunks_pad = steps * nsub
    p_pad = chunks_pad * sub

    ang2d = jnp.pad(ang2d, ((0, 0), (0, p_pad - P)))
    ang = jnp.transpose(ang2d.reshape(R, chunks_pad, sub), (1, 0, 2))

    m_hi, m_lo, zmat = _entangler_matrices(weights)

    out = pl.pallas_call(
        quanv_kernel,
        out_shape=jax.ShapeDtypeStruct((chunks_pad, 8, sub), jnp.float32),
        grid_spec=pltpu.PrefetchScalarGridSpec(
            num_scalar_prefetch=0,
            grid=(steps,),
            in_specs=[
                pl.BlockSpec((nsub, R, sub), lambda p: (p, 0, 0)),
                pl.BlockSpec((32, 32), lambda p: (0, 0)),
                pl.BlockSpec((32, 32), lambda p: (0, 0)),
                pl.BlockSpec((8, 16), lambda p: (0, 0)),
            ],
            out_specs=pl.BlockSpec((nsub, 8, sub), lambda p: (p, 0, 0)),
        ),
        compiler_params=pltpu.CompilerParams(
            dimension_semantics=("parallel",)),
        cost_estimate=pl.CostEstimate(
            flops=8000 * int(p_pad),
            transcendentals=2 * R * int(p_pad),
            bytes_accessed=4 * (R + 8) * int(p_pad)),
    )(ang, m_hi, m_lo, zmat)

    # reorder to match torch.cat([window_out(N,4) for each window], dim=1)
    out = jnp.transpose(out, (1, 0, 2)).reshape(8, p_pad)[:N_QUBITS, :P]
    out = out.reshape(N_QUBITS, n, n_win)
    return jnp.transpose(out, (1, 2, 0)).reshape(n, n_win * N_QUBITS)


# -------------------- independent NumPy reference (dense gates) ---------------
def quanv2d_ref(x, weights, kernel_size=KERNEL_SIZE):
    x = np.asarray(x, dtype=np.float64)
    wts = np.asarray(weights, dtype=np.float64)
    n, c, h, w = x.shape
    L = c * kernel_size * kernel_size
    vpq = L // N_QUBITS + 1
    gates = ['RZ', 'RY'] * math.ceil(vpq / 2)

    Hm = np.array([[1.0, 1.0], [1.0, -1.0]], dtype=np.complex128) / np.sqrt(2.0)
    bidx = ((np.arange(16)[:, None] >> np.arange(N_QUBITS - 1, -1, -1)[None, :]) & 1)

    def rz_mat(t):
        t = np.atleast_1d(np.asarray(t, dtype=np.float64))
        m = np.zeros(t.shape + (2, 2), dtype=np.complex128)
        m[..., 0, 0] = np.exp(-0.5j * t)
        m[..., 1, 1] = np.exp(0.5j * t)
        return m

    def ry_mat(t):
        t = np.atleast_1d(np.asarray(t, dtype=np.float64))
        ct, st = np.cos(t / 2), np.sin(t / 2)
        m = np.zeros(t.shape + (2, 2), dtype=np.complex128)
        m[..., 0, 0] = ct; m[..., 0, 1] = -st
        m[..., 1, 0] = st; m[..., 1, 1] = ct
        return m

    def apply_1q(state, mat, q):
        state = np.moveaxis(state, 1 + q, 4)
        if mat.ndim == 2:
            new = np.einsum('ij,pabcj->pabci', mat, state)
        else:
            new = np.einsum('pij,pabcj->pabci', mat, state)
        return np.moveaxis(new, 4, 1 + q)

    def apply_crz(state, theta, ctrl, tgt):
        phase = 0.5 * theta * bidx[:, ctrl] * (2 * bidx[:, tgt] - 1)
        diag = np.exp(1j * phase)
        shp = state.shape
        return (state.reshape(shp[0], 16) * diag[None, :]).reshape(shp)

    outs = []
    for i in range(0, h - 1, 2):
        for j in range(0, w - 1, 2):
            patch = x[:, :, i:i + kernel_size, j:j + kernel_size].reshape(n, L)
            state = np.zeros((n, 2, 2, 2, 2), dtype=np.complex128)
            state[:, 0, 0, 0, 0] = 1.0
            for q in range(N_QUBITS):
                state = apply_1q(state, Hm, q)
                for k in range(vpq):
                    idx = q * vpq + k
                    if idx < L:
                        t = patch[:, idx]
                        m = rz_mat(t) if gates[k] == 'RZ' else ry_mat(t)
                        state = apply_1q(state, m, q)
            for d in range(DEPTH):
                for i2 in range(N_QUBITS):
                    state = apply_crz(state, wts[d, i2], i2, (i2 + 1) % N_QUBITS)
                for j2 in range(N_QUBITS, 2 * N_QUBITS):
                    state = apply_1q(state, ry_mat(wts[d, j2])[0], j2 % N_QUBITS)
            prob = np.abs(state.reshape(n, 16)) ** 2
            outs.append(prob @ (1.0 - 2.0 * bidx))               # (n, 4)
    return np.concatenate(outs, axis=1)


# ----------------------------------- main --------------------------------------
if __name__ == "__main__":
    key = jax.random.PRNGKey(0)
    kx, kw = jax.random.split(key)

    # NCHW input, like the PyTorch module
    x = jax.random.normal(kx, (2, 4, 16, 16), dtype=jnp.float32)
    # TorchLayer weights: shape (depth, 2*n_qubits), uniform in [0, 2*pi)
    weights = jax.random.uniform(kw, (DEPTH, 2 * N_QUBITS),
                                 minval=0.0, maxval=2.0 * math.pi,
                                 dtype=jnp.float32)

    y = jax.block_until_ready(jax.jit(quanv2d)(x, weights))

    y_ref = quanv2d_ref(np.asarray(x), np.asarray(weights))
    assert y.shape == (2, 64 * N_QUBITS), y.shape
    err = float(np.max(np.abs(np.asarray(y) - y_ref)))
    assert err < 2e-4, err

    print("KERNEL_OK")
</pallas_src>

<mosaic_0001>
module attributes {stable_mosaic.version = 11 : i64} {
  func.func @quanv_kernel(%arg0: i32, %arg1: memref<1x40x128xf32, #tpu.memory_space<vmem>>, %arg2: memref<32x32xbf16, #tpu.memory_space<vmem>>, %arg3: memref<32x32xbf16, #tpu.memory_space<vmem>>, %arg4: memref<8x16xbf16, #tpu.memory_space<vmem>>, %arg5: memref<1x8x128xf32, #tpu.memory_space<vmem>>) attributes {dimension_semantics = [#tpu.dimension_semantics<parallel>], iteration_bounds = array<i64: 1>, scalar_prefetch = 0 : i64, scratch_operands = 0 : i64, tpu.core_type = #tpu.core_type<tc>, window_params = [{transform_indices = @transform_0, window_bounds = array<i64: 1, 40, 128>}, {pipeline_mode = #tpu.pipeline_mode<synchronous>, transform_indices = @transform_1, window_bounds = array<i64: 32, 32>}, {pipeline_mode = #tpu.pipeline_mode<synchronous>, transform_indices = @transform_2, window_bounds = array<i64: 32, 32>}, {pipeline_mode = #tpu.pipeline_mode<synchronous>, transform_indices = @transform_3, window_bounds = array<i64: 8, 16>}, {transform_indices = @transform_4, window_bounds = array<i64: 1, 8, 128>}]} {
    %c0 = arith.constant 0 : index
    %c0_0 = arith.constant 0 : index
    %0 = vector.load %arg2[%c0, %c0_0] : memref<32x32xbf16, #tpu.memory_space<vmem>>, vector<32x32xbf16>
    %c0_1 = arith.constant 0 : index
    %c0_2 = arith.constant 0 : index
    %1 = vector.load %arg3[%c0_1, %c0_2] : memref<32x32xbf16, #tpu.memory_space<vmem>>, vector<32x32xbf16>
    %c0_3 = arith.constant 0 : index
    %c0_4 = arith.constant 0 : index
    %2 = vector.load %arg4[%c0_3, %c0_4] : memref<8x16xbf16, #tpu.memory_space<vmem>>, vector<8x16xbf16>
    %c0_i32 = arith.constant 0 : i32
    %3 = arith.index_cast %c0_i32 : i32 to index
    %c0_5 = arith.constant 0 : index
    %c0_6 = arith.constant 0 : index
    %4 = vector.load %arg1[%3, %c0_5, %c0_6] : memref<1x40x128xf32, #tpu.memory_space<vmem>>, vector<1x40x128xf32>
    %5 = vector.shape_cast %4 : vector<1x40x128xf32> to vector<40x128xf32>
    %6 = math.cos %5 : vector<40x128xf32>
    %7 = math.sin %5 : vector<40x128xf32>
    %cst = arith.constant 0.707106769 : f32
    %8 = vector.broadcast %cst : f32 to vector<8x128xf32>
    %cst_7 = arith.constant 0.000000e+00 : f32
    %9 = vector.broadcast %cst_7 : f32 to vector<8x128xf32>
    %10 = vector.extract_strided_slice %6 {offsets = [0, 0], sizes = [8, 128], strides = [1, 1]} : vector<40x128xf32> to vector<8x128xf32>
    %11 = vector.extract_strided_slice %7 {offsets = [0, 0], sizes = [8, 128], strides = [1, 1]} : vector<40x128xf32> to vector<8x128xf32>
    %12 = arith.mulf %8, %10 : vector<8x128xf32>
    %13 = arith.mulf %9, %11 : vector<8x128xf32>
    %14 = arith.subf %12, %13 : vector<8x128xf32>
    %15 = arith.mulf %9, %10 : vector<8x128xf32>
    %16 = arith.mulf %8, %11 : vector<8x128xf32>
    %17 = arith.addf %15, %16 : vector<8x128xf32>
    %18 = vector.extract_strided_slice %6 {offsets = [8, 0], sizes = [8, 128], strides = [1, 1]} : vector<40x128xf32> to vector<8x128xf32>
    %19 = vector.extract_strided_slice %7 {offsets = [8, 0], sizes = [8, 128], strides = [1, 1]} : vector<40x128xf32> to vector<8x128xf32>
    %c4_i32 = arith.constant 4 : i32
    %20 = tpu.dynamic_rotate %14 by %c4_i32 dim 0 : vector<8x128xf32>, i32 -> vector<8x128xf32>
    %c4_i32_8 = arith.constant 4 : i32
    %21 = tpu.dynamic_rotate %17 by %c4_i32_8 dim 0 : vector<8x128xf32>, i32 -> vector<8x128xf32>
    %22 = arith.mulf %18, %14 : vector<8x128xf32>
    %23 = arith.mulf %19, %20 : vector<8x128xf32>
    %24 = arith.addf %22, %23 : vector<8x128xf32>
    %25 = arith.mulf %18, %17 : vector<8x128xf32>
    %26 = arith.mulf %19, %21 : vector<8x128xf32>
    %27 = arith.addf %25, %26 : vector<8x128xf32>
    %28 = vector.extract_strided_slice %6 {offsets = [16, 0], sizes = [8, 128], strides = [1, 1]} : vector<40x128xf32> to vector<8x128xf32>
    %29 = vector.extract_strided_slice %7 {offsets = [16, 0], sizes = [8, 128], strides = [1, 1]} : vector<40x128xf32> to vector<8x128xf32>
    %30 = arith.mulf %24, %28 : vector<8x128xf32>
    %31 = arith.mulf %27, %29 : vector<8x128xf32>
    %32 = arith.subf %30, %31 : vector<8x128xf32>
    %33 = arith.mulf %27, %28 : vector<8x128xf32>
    %34 = arith.mulf %24, %29 : vector<8x128xf32>
    %35 = arith.addf %33, %34 : vector<8x128xf32>
    %36 = vector.extract_strided_slice %6 {offsets = [24, 0], sizes = [8, 128], strides = [1, 1]} : vector<40x128xf32> to vector<8x128xf32>
    %37 = vector.extract_strided_slice %7 {offsets = [24, 0], sizes = [8, 128], strides = [1, 1]} : vector<40x128xf32> to vector<8x128xf32>
    %c4_i32_9 = arith.constant 4 : i32
    %38 = tpu.dynamic_rotate %32 by %c4_i32_9 dim 0 : vector<8x128xf32>, i32 -> vector<8x128xf32>
    %c4_i32_10 = arith.constant 4 : i32
    %39 = tpu.dynamic_rotate %35 by %c4_i32_10 dim 0 : vector<8x128xf32>, i32 -> vector<8x128xf32>
    %40 = arith.mulf %36, %32 : vector<8x128xf32>
    %41 = arith.mulf %37, %38 : vector<8x128xf32>
    %42 = arith.addf %40, %41 : vector<8x128xf32>
    %43 = arith.mulf %36, %35 : vector<8x128xf32>
    %44 = arith.mulf %37, %39 : vector<8x128xf32>
    %45 = arith.addf %43, %44 : vector<8x128xf32>
    %46 = vector.extract_strided_slice %6 {offsets = [32, 0], sizes = [8, 128], strides = [1, 1]} : vector<40x128xf32> to vector<8x128xf32>
    %47 = vector.extract_strided_slice %7 {offsets = [32, 0], sizes = [8, 128], strides = [1, 1]} : vector<40x128xf32> to vector<8x128xf32>
    %48 = arith.mulf %42, %46 : vector<8x128xf32>
    %49 = arith.mulf %45, %47 : vector<8x128xf32>
    %50 = arith.subf %48, %49 : vector<8x128xf32>
    %51 = arith.mulf %45, %46 : vector<8x128xf32>
    %52 = arith.mulf %42, %47 : vector<8x128xf32>
    %53 = arith.addf %51, %52 : vector<8x128xf32>
    %54 = vector.extract_strided_slice %50 {offsets = [6, 0], sizes = [2, 128], strides = [1, 1]} : vector<8x128xf32> to vector<2x128xf32>
    %55 = vector.extract_strided_slice %50 {offsets = [0, 0], sizes = [6, 128], strides = [1, 1]} : vector<8x128xf32> to vector<6x128xf32>
    %56 = tpu.concatenate %54, %55 in 0 : vector<2x128xf32>, vector<6x128xf32> -> vector<8x128xf32>
    %57 = vector.extract_strided_slice %53 {offsets = [6, 0], sizes = [2, 128], strides = [1, 1]} : vector<8x128xf32> to vector<2x128xf32>
    %58 = vector.extract_strided_slice %53 {offsets = [0, 0], sizes = [6, 128], strides = [1, 1]} : vector<8x128xf32> to vector<6x128xf32>
    %59 = tpu.concatenate %57, %58 in 0 : vector<2x128xf32>, vector<6x128xf32> -> vector<8x128xf32>
    %60 = arith.mulf %50, %56 : vector<8x128xf32>
    %61 = arith.mulf %53, %59 : vector<8x128xf32>
    %62 = arith.subf %60, %61 : vector<8x128xf32>
    %63 = arith.mulf %50, %59 : vector<8x128xf32>
    %64 = arith.mulf %53, %56 : vector<8x128xf32>
    %65 = arith.addf %63, %64 : vector<8x128xf32>
    %66 = vector.extract_strided_slice %62 {offsets = [7, 0], sizes = [1, 128], strides = [1, 1]} : vector<8x128xf32> to vector<1x128xf32>
    %67 = vector.extract_strided_slice %62 {offsets = [0, 0], sizes = [7, 128], strides = [1, 1]} : vector<8x128xf32> to vector<7x128xf32>
    %68 = tpu.concatenate %66, %67 in 0 : vector<1x128xf32>, vector<7x128xf32> -> vector<8x128xf32>
    %69 = vector.extract_strided_slice %65 {offsets = [7, 0], sizes = [1, 128], strides = [1, 1]} : vector<8x128xf32> to vector<1x128xf32>
    %70 = vector.extract_strided_slice %65 {offsets = [0, 0], sizes = [7, 128], strides = [1, 1]} : vector<8x128xf32> to vector<7x128xf32>
    %71 = tpu.concatenate %69, %70 in 0 : vector<1x128xf32>, vector<7x128xf32> -> vector<8x128xf32>
    %72 = vector.extract_strided_slice %62 {offsets = [5, 0], sizes = [3, 128], strides = [1, 1]} : vector<8x128xf32> to vector<3x128xf32>
    %73 = vector.extract_strided_slice %62 {offsets = [0, 0], sizes = [5, 128], strides = [1, 1]} : vector<8x128xf32> to vector<5x128xf32>
    %74 = tpu.concatenate %72, %73 in 0 : vector<3x128xf32>, vector<5x128xf32> -> vector<8x128xf32>
    %75 = vector.extract_strided_slice %65 {offsets = [5, 0], sizes = [3, 128], strides = [1, 1]} : vector<8x128xf32> to vector<3x128xf32>
    %76 = vector.extract_strided_slice %65 {offsets = [0, 0], sizes = [5, 128], strides = [1, 1]} : vector<8x128xf32> to vector<5x128xf32>
    %77 = tpu.concatenate %75, %76 in 0 : vector<3x128xf32>, vector<5x128xf32> -> vector<8x128xf32>
    %78 = arith.mulf %62, %68 : vector<8x128xf32>
    %79 = arith.mulf %65, %71 : vector<8x128xf32>
    %80 = arith.subf %78, %79 : vector<8x128xf32>
    %81 = arith.mulf %62, %74 : vector<8x128xf32>
    %82 = arith.mulf %65, %77 : vector<8x128xf32>
    %83 = arith.subf %81, %82 : vector<8x128xf32>
    %84 = arith.mulf %62, %71 : vector<8x128xf32>
    %85 = arith.mulf %65, %68 : vector<8x128xf32>
    %86 = arith.addf %84, %85 : vector<8x128xf32>
    %87 = arith.mulf %62, %77 : vector<8x128xf32>
    %88 = arith.mulf %65, %74 : vector<8x128xf32>
    %89 = arith.addf %87, %88 : vector<8x128xf32>
    %90 = tpu.concatenate %80, %83, %86, %89 in 0 : vector<8x128xf32>, vector<8x128xf32>, vector<8x128xf32>, vector<8x128xf32> -> vector<32x128xf32>
    %91 = arith.truncf %90 : vector<32x128xf32> to vector<32x128xbf16>
    %92 = arith.extf %91 : vector<32x128xbf16> to vector<32x128xf32>
    %93 = arith.subf %90, %92 : vector<32x128xf32>
    %94 = arith.truncf %93 : vector<32x128xf32> to vector<32x128xbf16>
    %cst_11 = arith.constant dense<0.000000e+00> : vector<32x128xf32>
    %95 = tpu.matmul %0, %91, %cst_11 {dimension_numbers = #tpu.dot_dimension_numbers<[1], [0], [0], [1], [0, 0, 1, 1], [], []>} : vector<32x32xbf16>, vector<32x128xbf16>, vector<32x128xf32> -> vector<32x128xf32>
    %cst_12 = arith.constant dense<0.000000e+00> : vector<32x128xf32>
    %96 = tpu.matmul %0, %94, %cst_12 {dimension_numbers = #tpu.dot_dimension_numbers<[1], [0], [0], [1], [0, 0, 1, 1], [], []>} : vector<32x32xbf16>, vector<32x128xbf16>, vector<32x128xf32> -> vector<32x128xf32>
    %97 = arith.addf %95, %96 : vector<32x128xf32>
    %cst_13 = arith.constant dense<0.000000e+00> : vector<32x128xf32>
    %98 = tpu.matmul %1, %91, %cst_13 {dimension_numbers = #tpu.dot_dimension_numbers<[1], [0], [0], [1], [0, 0, 1, 1], [], []>} : vector<32x32xbf16>, vector<32x128xbf16>, vector<32x128xf32> -> vector<32x128xf32>
    %99 = arith.addf %97, %98 : vector<32x128xf32>
    %100 = vector.extract_strided_slice %99 {offsets = [0, 0], sizes = [16, 128], strides = [1, 1]} : vector<32x128xf32> to vector<16x128xf32>
    %101 = vector.extract_strided_slice %99 {offsets = [0, 0], sizes = [16, 128], strides = [1, 1]} : vector<32x128xf32> to vector<16x128xf32>
    %102 = arith.mulf %100, %101 : vector<16x128xf32>
    %103 = vector.extract_strided_slice %99 {offsets = [16, 0], sizes = [16, 128], strides = [1, 1]} : vector<32x128xf32> to vector<16x128xf32>
    %104 = vector.extract_strided_slice %99 {offsets = [16, 0], sizes = [16, 128], strides = [1, 1]} : vector<32x128xf32> to vector<16x128xf32>
    %105 = arith.mulf %103, %104 : vector<16x128xf32>
    %106 = arith.addf %102, %105 : vector<16x128xf32>
    %107 = arith.truncf %106 : vector<16x128xf32> to vector<16x128xbf16>
    %108 = arith.extf %107 : vector<16x128xbf16> to vector<16x128xf32>
    %109 = arith.subf %106, %108 : vector<16x128xf32>
    %110 = arith.truncf %109 : vector<16x128xf32> to vector<16x128xbf16>
    %cst_14 = arith.constant dense<0.000000e+00> : vector<8x128xf32>
    %111 = tpu.matmul %2, %107, %cst_14 {dimension_numbers = #tpu.dot_dimension_numbers<[1], [0], [0], [1], [0, 0, 1, 1], [], []>} : vector<8x16xbf16>, vector<16x128xbf16>, vector<8x128xf32> -> vector<8x128xf32>
    %cst_15 = arith.constant dense<0.000000e+00> : vector<8x128xf32>
    %112 = tpu.matmul %2, %110, %cst_15 {dimension_numbers = #tpu.dot_dimension_numbers<[1], [0], [0], [1], [0, 0, 1, 1], [], []>} : vector<8x16xbf16>, vector<16x128xbf16>, vector<8x128xf32> -> vector<8x128xf32>
    %113 = arith.addf %111, %112 : vector<8x128xf32>
    %114 = arith.index_cast %c0_i32 : i32 to index
    %c0_16 = arith.constant 0 : index
    %c0_17 = arith.constant 0 : index
    %115 = vector.load %arg5[%114, %c0_16, %c0_17] : memref<1x8x128xf32, #tpu.memory_space<vmem>>, vector<1x8x128xf32>
    %116 = vector.shape_cast %115 : vector<1x8x128xf32> to vector<8x128xf32>
    %117 = vector.shape_cast %113 : vector<8x128xf32> to vector<1x8x128xf32>
    tpu.vector_store %arg5[%114, %c0_16, %c0_17], %117 {strides = array<i32>} : memref<1x8x128xf32, #tpu.memory_space<vmem>>, vector<1x8x128xf32>,
    %c1_i32 = arith.constant 1 : i32
    return
  }
  func.func @transform_0(%arg0: i32) -> (i32, i32, i32) {
    %c0_i32 = arith.constant 0 : i32
    %c0_i32_0 = arith.constant 0 : i32
    %c0_i32_1 = arith.constant 0 : i32
    return %arg0, %c0_i32, %c0_i32_0 : i32, i32, i32
  }
  func.func @transform_1(%arg0: i32) -> (i32, i32) {
    %c0_i32 = arith.constant 0 : i32
    %c0_i32_0 = arith.constant 0 : i32
    %c0_i32_1 = arith.constant 0 : i32
    return %c0_i32, %c0_i32_0 : i32, i32
  }
  func.func @transform_2(%arg0: i32) -> (i32, i32) {
    %c0_i32 = arith.constant 0 : i32
    %c0_i32_0 = arith.constant 0 : i32
    %c0_i32_1 = arith.constant 0 : i32
    return %c0_i32, %c0_i32_0 : i32, i32
  }
  func.func @transform_3(%arg0: i32) -> (i32, i32) {
    %c0_i32 = arith.constant 0 : i32
    %c0_i32_0 = arith.constant 0 : i32
    %c0_i32_1 = arith.constant 0 : i32
    return %c0_i32, %c0_i32_0 : i32, i32
  }
  func.func @transform_4(%arg0: i32) -> (i32, i32, i32) {
    %c0_i32 = arith.constant 0 : i32
    %c0_i32_0 = arith.constant 0 : i32
    %c0_i32_1 = arith.constant 0 : i32
    return %arg0, %c0_i32, %c0_i32_0 : i32, i32, i32
  }
}

</mosaic_0001>

<bundles_post_ra>
// kernel: quanv2d.1
= control target key start
LH: loop header
LB: loop body
LE: loop exit
PB: predicated region body
PF: predicated region fallthrough
CT: control target
= control target key end

     0   :  { %v1609_v26 = vmov 683565275   ;;  %v1610_v28 = vmov 2475754826   ;;  %v1611_v30 = vmov 2131351028   ;;  %s2081_s0 = inlined_call_operand.vmem [shape: f32[1,40,128], index: 0, kind: input, shape index: {}]   ;;  %s2082_s1 = inlined_call_operand.vmem [shape: bf16[32,32], index: 1, kind: input, shape index: {}]   ;;  %s2083_s2 = inlined_call_operand.vmem [shape: bf16[32,32], index: 2, kind: input, shape index: {}]   ;;  %s2084_s3 = inlined_call_operand.vmem [shape: bf16[8,16], index: 3, kind: input, shape index: {}]   ;;  %s2085_s4 = inlined_call_operand.vmem [shape: f32[1,8,128], index: 4, kind: output, shape index: {}]  }
   0x1   :  { %v1645_v0 = vld [vmem:[%s2081_s0] sm:$0xff]  ;;  %v1650_v1 = vld [vmem:[%s2081_s0 + $0x8] sm:$0xff]  ;;  %v1657_v4 = vld [vmem:[%s2081_s0 + $0x10] sm:$0xff]  ;;  %v1612_v32 = vmov 2102212464  }
   0x2   :  { %v32_v2 = vand.u32 2147483647, %v1645_v0  ;;  %v35_v3 = vand.u32 2139095040, %v1645_v0  ;;  %v135_v5 = vand.u32 2147483647, %v1650_v1  ;;  %v138_v8 = vand.u32 2139095040, %v1650_v1 }
   0x3   :  { %v241_v11 = vand.u32 2139095040, %v1657_v4  ;;  %v1613_v34 = vmov 920167782   ;;  %v1614_v41 = vmov 1326507024  }
   0x4   :  { %v36_v6 = vshrl.u32 %v35_v3, 23  ;;  %v39_v7 = vand.u32 8388607, %v32_v2  ;;  %v142_v9 = vand.u32 8388607, %v135_v5  ;;  %v139_v12 = vshrl.u32 %v138_v8, 23 }
   0x5   :  { %v242_v17 = vshrl.u32 %v241_v11, 23 }
   0x6   :  { %v1441_v10 = vadd.s32 4294967169, %v36_v6  ;;  %v40_v14 = vor.u32 8388608, %v39_v7  ;;  %v1445_v15 = vadd.s32 4294967169, %v139_v12  ;;  %v143_v16 = vor.u32 8388608, %v142_v9 }
   0x7   :  { %v1670_v24 = vadd.s32 4294967169, %v242_v17 }
   0x8   :  { %v42_v13 = vadd.s32 1, %v1441_v10  ;;  %v145_v19 = vadd.s32 1, %v1445_v15  ;;  %v1666_v22 = vshll.u32 %v40_v14, 8  ;;  %v1668_v23 = vshll.u32 %v143_v16, 8 }
   0xa   :  { %vm43_vm0 = vcmp.gt.s32.totalorder %v42_v13, 0  ;;  %vm146_vm1 = vcmp.gt.s32.totalorder %v145_v19, 0 }
   0xb   :  { %v44_v18 = vsel %vm43_vm0, %v42_v13, 0  ;;  %v147_v46 = vsel %vm146_vm1, %v145_v19, 0 }
   0xc   :  { %v45_v20 = vshrl.u32 %v44_v18, 5  ;;  %v46_v21 = vand.u32 31, %v44_v18  ;;  %v148_v49 = vshrl.u32 %v147_v46, 5  ;;  %v149_v50 = vand.u32 31, %v147_v46 }
   0xe   :  { %v47_v25 = vsub.s32 32, %v46_v21  ;;  %v49_v27 = vshll.u32 %v1609_v26, %v46_v21  ;;  %v52_v29 = vshll.u32 %v1610_v28, %v46_v21  ;;  %v55_v31 = vshll.u32 %v1611_v30, %v46_v21 }
   0xf   :  { %v58_v33 = vshll.u32 %v1612_v32, %v46_v21  ;;  %v61_v35 = vshll.u32 %v1613_v34, %v46_v21  ;;  %vm64_vm2 = vcmp.lt.s32.totalorder %v45_v20, 1  ;;  %vm65_vm3 = vcmp.lt.s32.totalorder %v45_v20, 2 }
  0x10   :  { %v48_v36 = vshrl.u32 %v1609_v26, %v47_v25  ;;  %v50_v37 = vshrl.u32 %v1610_v28, %v47_v25  ;;  %v53_v38 = vshrl.u32 %v1611_v30, %v47_v25  ;;  %v56_v39 = vshrl.u32 %v1612_v32, %v47_v25 }
  0x11   :  { %v59_v40 = vshrl.u32 %v1613_v34, %v47_v25  ;;  %v62_v42 = vshrl.u32 %v1614_v41, %v47_v25  ;;  %vm66_vm4 = vcmp.lt.s32.totalorder %v45_v20, 3  ;;  %vm67_vm5 = vcmp.lt.s32.totalorder %v45_v20, 4 }
  0x12   :  { %v51_v43 = vor.u32 %v50_v37, %v49_v27  ;;  %v54_v44 = vor.u32 %v53_v38, %v52_v29  ;;  %v57_v45 = vor.u32 %v56_v39, %v55_v31  ;;  %v150_v58 = vsub.s32 32, %v149_v50 }
  0x13   :  { %v60_v47 = vor.u32 %v59_v40, %v58_v33  ;;  %v63_v48 = vor.u32 %v62_v42, %v61_v35  ;;  %v152_v62 = vshll.u32 %v1609_v26, %v149_v50  ;;  %v155_v13 = vshll.u32 %v1610_v28, %v149_v50 }
  0x14   :  { %v68_v51 = vsel %vm64_vm2, %v48_v36, %v51_v43  ;;  %v69_v52 = vsel %vm67_vm5, %v57_v45, 2102212464  ;;  %v72_v53 = vsel %vm64_vm2, %v51_v43, %v54_v44  ;;  %v76_v54 = vsel %vm64_vm2, %v54_v44, %v57_v45 }
  0x15   :  { %v70_v55 = vsel %vm66_vm4, %v54_v44, %v69_v52  ;;  %v73_v56 = vsel %vm67_vm5, %v60_v47, 920167782  ;;  %v77_v57 = vsel %vm67_vm5, %v63_v48, 1326507024  ;;  %v151_v7 = vshrl.u32 %v1609_v26, %v150_v58 }
  0x16   :  { %v71_v59 = vsel %vm65_vm3, %v68_v51, %v70_v55  ;;  %v74_v60 = vsel %vm66_vm4, %v57_v45, %v73_v56  ;;  %v78_v61 = vsel %vm66_vm4, %v60_v47, %v77_v57  ;;  %v153_v12 = vshrl.u32 %v1610_v28, %v150_v58 }
  0x17   :  { %v75_v63 = vsel %vm65_vm3, %v72_v53, %v74_v60  ;;  %v79_v3 = vsel %vm65_vm3, %v76_v54, %v78_v61  ;;  %v87_v6 = vmul.u32 %v1666_v22, %v71_v59  ;;  %v156_v14 = vshrl.u32 %v1611_v30, %v150_v58  ;;  %v1743_v61 = vld [vmem:[%s2081_s0 + $0x18] sm:$0xff] }
  0x18   :  { %v1697_v8 = vmul.u32.u64.low %v1666_v22, %v79_v3  ;;  %v1698_v9 = vmul.u32.u64.high %v1666_v22, %v79_v3, %v1697_v8  ;;  %v1701_v10 = vmul.u32.u64.low %v1666_v22, %v75_v63  ;;  %v1702_v11 = vmul.u32.u64.high %v1666_v22, %v75_v63, %v1701_v10 }
  0x19   :  { %v158_v15 = vshll.u32 %v1611_v30, %v149_v50  ;;  %v159_v16 = vshrl.u32 %v1612_v32, %v150_v58  ;;  %v161_v17 = vshll.u32 %v1612_v32, %v149_v50  ;;  %v162_v18 = vshrl.u32 %v1613_v34, %v150_v58 }
  0x1a   :  { %v164_v19 = vshll.u32 %v1613_v34, %v149_v50  ;;  %v154_v20 = vor.u32 %v153_v12, %v152_v62  ;;  %v157_v21 = vor.u32 %v156_v14, %v155_v13  ;;  %v165_v22 = vshrl.u32 %v1614_v41, %v150_v58 }
  0x1b   :  { %vm167_vm6 = vcmp.lt.s32.totalorder %v148_v49, 1  ;;  %vm89_vm7 = vc.u32 %v1698_v9, %v1701_v10  ;;  %v90_v25 = vadd.s32 1, %v1702_v11  ;;  %v160_v27 = vor.u32 %v159_v16, %v158_v15 }
  0x1c   :  { %v248_v29 = vadd.s32 1, %v1670_v24  ;;  %v163_v31 = vor.u32 %v162_v18, %v161_v17  ;;  %v166_v33 = vor.u32 %v165_v22, %v164_v19  ;;  %vm168_vm8 = vcmp.lt.s32.totalorder %v148_v49, 2 }
  0x1d   :  { %vm169_vm9 = vcmp.lt.s32.totalorder %v148_v49, 3  ;;  %v91_v35 = vsel %vm89_vm7, %v90_v25, %v1702_v11  ;;  %vm170_vm10 = vcmp.lt.s32.totalorder %v148_v49, 4  ;;  %v171_v36 = vsel %vm167_vm6, %v151_v7, %v154_v20 }
  0x1e   :  { %v175_v37 = vsel %vm167_vm6, %v154_v20, %v157_v21  ;;  %v92_v38 = vadd.s32 %v91_v35, %v87_v6  ;;  %v172_v39 = vsel %vm170_vm10, %v160_v27, 2102212464  ;;  %v176_v40 = vsel %vm170_vm10, %v163_v31, 920167782 }
  0x1f   :  { %v179_v42 = vsel %vm167_vm6, %v157_v21, %v160_v27  ;;  %v173_v43 = vsel %vm169_vm9, %v157_v21, %v172_v39  ;;  %v177_v44 = vsel %vm169_vm9, %v160_v27, %v176_v40  ;;  %v180_v45 = vsel %vm170_vm10, %v166_v33, 1326507024 }
  0x20   :  { %vm249_vm11 = vcmp.gt.s32.totalorder %v248_v29, 0  ;;  %v93_v24 = vadd.s32 536870912, %v92_v38  ;;  %v178_v46 = vsel %vm168_vm8, %v175_v37, %v177_v44  ;;  %v181_v47 = vsel %vm169_vm9, %v163_v31, %v180_v45 }
  0x21   :  { %v174_v48 = vsel %vm168_vm8, %v171_v36, %v173_v43  ;;  %v182_v50 = vsel %vm168_vm8, %v179_v42, %v181_v47  ;;  %v1726_v51 = vmul.u32.u64.low %v1668_v23, %v178_v46  ;;  %v1727_v52 = vmul.u32.u64.high %v1668_v23, %v178_v46, %v1726_v51 }
  0x22   :  { %v1730_v53 = vshrl.u32 %v93_v24, 30  ;;  %v1733_v54 = vmul.u32.u64.low %v1668_v23, %v182_v50  ;;  %v1734_v55 = vmul.u32.u64.high %v1668_v23, %v182_v50, %v1733_v54  ;;  %v250_v56 = vsel %vm249_vm11, %v248_v29, 0 }
  0x23   :  { %v252_v57 = vand.u32 31, %v250_v56  ;;  %v190_v59 = vmul.u32 %v1668_v23, %v174_v48  ;;  %v238_v49 = vand.u32 2147483647, %v1657_v4  ;;  %v193_v60 = vadd.s32 1, %v1727_v52 }
  0x24   :  { %v95_v58 = vshll.u32 %v1730_v53, 30  ;;  %vm192_vm12 = vc.u32 %v1734_v55, %v1726_v51  ;;  %v251_v8 = vshrl.u32 %v250_v56, 5  ;;  %v344_v13 = vand.u32 2139095040, %v1743_v61 }
  0x25   :  { %v253_v63 = vsub.s32 32, %v252_v57  ;;  %v194_v3 = vsel %vm192_vm12, %v193_v60, %v1727_v52  ;;  %v245_v7 = vand.u32 8388607, %v238_v49  ;;  %v255_v11 = vshll.u32 %v1609_v26, %v252_v57 }
  0x26   :  { %v1745_v62 = vsub.s32 %v92_v38, %v95_v58  ;;  %v195_v23 = vadd.s32 %v194_v3, %v190_v59  ;;  %v264_v12 = vshll.u32 %v1612_v32, %v252_v57  ;;  %v258_v16 = vshll.u32 %v1610_v28, %v252_v57 }
  0x27   :  { %v256_v15 = vshrl.u32 %v1610_v28, %v253_v63  ;;  %v259_v17 = vshrl.u32 %v1611_v30, %v253_v63  ;;  %v261_v19 = vshll.u32 %v1611_v30, %v252_v57  ;;  %v262_v20 = vshrl.u32 %v1612_v32, %v253_v63 }
  0x28   :  { %v98_v6 = vsub.s32 0, %v1745_v62  ;;  %v196_v18 = vadd.s32 536870912, %v195_v23  ;;  %v265_v21 = vshrl.u32 %v1613_v34, %v253_v63  ;;  %v267_v25 = vshll.u32 %v1613_v34, %v252_v57 }
  0x29   :  { %v268_v27 = vshrl.u32 %v1614_v41, %v253_v63  ;;  %v246_v31 = vor.u32 8388608, %v245_v7  ;;  %v345_v35 = vshrl.u32 %v344_v13, 23  ;;  %v257_v37 = vor.u32 %v256_v15, %v255_v11 }
  0x2a   :  { %v1442_v14 = vmin.u32 %v98_v6, %v1745_v62  ;;  %v1765_v29 = vshrl.u32 %v196_v18, 30  ;;  %v266_v33 = vor.u32 %v265_v21, %v264_v12  ;;  %v260_v38 = vor.u32 %v259_v17, %v258_v16 }
  0x2b   :  { %vm273_vm13 = vcmp.lt.s32.totalorder %v251_v8, 4  ;;  %v263_v40 = vor.u32 %v262_v20, %v261_v19  ;;  %v269_v42 = vor.u32 %v268_v27, %v267_v25  ;;  %vm270_vm14 = vcmp.lt.s32.totalorder %v251_v8, 1 }
  0x2c   :  { %v100_v22 = vclz %v1442_v14  ;;  %v198_v39 = vshll.u32 %v1765_v29, 30  ;;  %v254_v43 = vshrl.u32 %v1609_v26, %v253_v63  ;;  %vm272_vm0 = vcmp.lt.s32.totalorder %v251_v8, 3 }
  0x2d   :  { %v279_v44 = vsel %vm273_vm13, %v266_v33, 920167782  ;;  %v286_v24 = vshll.u32 %v246_v31, 8  ;;  %v1453_v46 = vadd.s32 4294967169, %v345_v35  ;;  %vm271_vm1 = vcmp.lt.s32.totalorder %v251_v8, 2 }
  0x2e   :  { %v1443_v36 = vadd.s32 4294967294, %v100_v22  ;;  %v1770_v45 = vsub.s32 %v195_v23, %v198_v39  ;;  %v275_v48 = vsel %vm273_vm13, %v263_v40, 2102212464  ;;  %v278_v50 = vsel %vm270_vm14, %v257_v37, %v260_v38 }
  0x2f   :  { %v280_v54 = vsel %vm272_vm0, %v263_v40, %v279_v44  ;;  %v282_v56 = vsel %vm270_vm14, %v260_v38, %v263_v40  ;;  %v283_v57 = vsel %vm273_vm13, %v269_v42, 1326507024  ;;  %v274_v58 = vsel %vm270_vm14, %v254_v43, %v257_v37 }
  0x30   :  { %vm1444_vm15 = vcmp.lt.s32.totalorder %v1443_v36, 0  ;;  %v201_v52 = vsub.s32 0, %v1770_v45  ;;  %v284_v59 = vsel %vm272_vm0, %v266_v33, %v283_v57  ;;  %v276_v3 = vsel %vm272_vm0, %v260_v38, %v275_v48 }
  0x31   :  { %v103_v47 = vsel %vm1444_vm15, 0, %v1443_v36  ;;  %v281_v6 = vsel %vm271_vm1, %v278_v50, %v280_v54  ;;  %v285_v23 = vsel %vm271_vm1, %v282_v56, %v284_v59  ;;  %v351_v13 = vadd.s32 1, %v1453_v46  ;;  %v1818_v59 = vld [vmem:[%s2081_s0 + $0x20] sm:$0xff] }
  0x32   :  { %v108_v60 = vsub.s32 4294967266, %v103_v47  ;;  %v1446_v63 = vmin.u32 %v201_v52, %v1770_v45  ;;  %v1784_v11 = vmul.u32.u64.low %v286_v24, %v285_v23  ;;  %v1785_v12 = vmul.u32.u64.high %v286_v24, %v285_v23, %v1784_v11 }
  0x33   :  { %v88_v14 = vadd.s32 %v1701_v10, %v1698_v9  ;;  %v277_v15 = vsel %vm271_vm1, %v274_v58, %v276_v3  ;;  %v1790_v16 = vmul.u32.u64.low %v286_v24, %v281_v6  ;;  %v1791_v17 = vmul.u32.u64.high %v286_v24, %v281_v6, %v1790_v16 }
  0x34   :  { %v203_v7 = vclz %v1446_v63  ;;  %v104_v18 = vsub.s32 32, %v103_v47  ;;  %v109_v19 = vadd.s32 127, %v108_v60  ;;  %vm352_vm2 = vcmp.gt.s32.totalorder %v351_v13, 0 }
  0x35   :  { %v353_v21 = vsel %vm352_vm2, %v351_v13, 0  ;;  %v293_v22 = vmul.u32 %v286_v24, %v277_v15  ;;  %vm295_vm4 = vc.u32 %v1785_v12, %v1790_v16  ;;  %v296_v27 = vadd.s32 1, %v1791_v17 }
  0x36   :  { %v1447_v20 = vadd.s32 4294967294, %v203_v7  ;;  %v341_v9 = vand.u32 2147483647, %v1743_v61  ;;  %v355_v10 = vand.u32 31, %v353_v21  ;;  %v105_v8 = vshll.u32 %v1745_v62, %v103_v47 }
  0x37   :  { %v106_v31 = vshrl.u32 %v88_v14, %v104_v18  ;;  %v110_v33 = vshll.u32 %v109_v19, 23  ;;  %v297_v36 = vsel %vm295_vm4, %v296_v27, %v1791_v17  ;;  %v191_v39 = vadd.s32 %v1726_v51, %v1734_v55 }
  0x38   :  { %vm1448_vm3 = vcmp.lt.s32.totalorder %v1447_v20, 0  ;;  %v298_v37 = vadd.s32 %v297_v36, %v293_v22  ;;  %v356_v38 = vsub.s32 32, %v355_v10  ;;  %v348_v40 = vand.u32 8388607, %v341_v9 }
  0x39   :  { %v206_v25 = vsel %vm1448_vm3, 0, %v1447_v20  ;;  %v107_v42 = vor.u32 %v106_v31, %v105_v8  ;;  %v111_v43 = vor.u32 4788187, %v110_v33  ;;  %v354_v48 = vshrl.u32 %v353_v21, 5 }
  0x3a   :  { %v211_v35 = vsub.s32 4294967266, %v206_v25  ;;  %v207_v44 = vsub.s32 32, %v206_v25  ;;  %v299_v24 = vadd.s32 536870912, %v298_v37  ;;  %v358_v62 = vshll.u32 %v1609_v26, %v355_v10 }
  0x3b   :  { %v361_v47 = vshll.u32 %v1610_v28, %v355_v10  ;;  %v359_v52 = vshrl.u32 %v1610_v28, %v356_v38  ;;  %v362_v54 = vshrl.u32 %v1611_v30, %v356_v38  ;;  %v364_v51 = vshll.u32 %v1611_v30, %v355_v10 }
  0x3c   :  { %v212_v46 = vadd.s32 127, %v211_v35  ;;  %v1806_v50 = vshrl.u32 %v299_v24, 30  ;;  %v365_v55 = vshrl.u32 %v1612_v32, %v356_v38  ;;  %v367_v56 = vshll.u32 %v1612_v32, %v355_v10 }
  0x3d   :  { %v368_v57 = vshrl.u32 %v1613_v34, %v356_v38  ;;  %v370_v58 = vshll.u32 %v1613_v34, %v355_v10  ;;  %v208_v60 = vshll.u32 %v1770_v45, %v206_v25  ;;  %v209_v63 = vshrl.u32 %v191_v39, %v207_v44 }
  0x3e   :  { %v301_v3 = vshll.u32 %v1806_v50, 30  ;;  %v371_v6 = vshrl.u32 %v1614_v41, %v356_v38  ;;  %v114_v23 = vcvt.s32.f32 %v107_v42  ;;  %v213_v7 = vshll.u32 %v212_v46, 23 }
  0x3f   :  { %v349_v11 = vor.u32 8388608, %v348_v40  ;;  %v369_v13 = vor.u32 %v368_v57, %v367_v56  ;;  %v360_v15 = vor.u32 %v359_v52, %v358_v62  ;;  %v363_v17 = vor.u32 %v362_v54, %v361_v47 }
  0x40   :  { %v1823_v14 = vsub.s32 %v298_v37, %v301_v3  ;;  %v372_v18 = vor.u32 %v371_v6, %v370_v58  ;;  %v366_v19 = vor.u32 %v365_v55, %v364_v51  ;;  %vm373_vm5 = vcmp.lt.s32.totalorder %v354_v48, 1 }
  0x41   :  { %vm376_vm6 = vcmp.lt.s32.totalorder %v354_v48, 4  ;;  %v447_v20 = vand.u32 2139095040, %v1818_v59  ;;  %v112_v45 = vand.u32 2147483647, %v111_v43  ;;  %v210_v21 = vor.u32 %v209_v63, %v208_v60 }
  0x42   :  { %v304_v22 = vsub.s32 0, %v1823_v14  ;;  %vm375_vm7 = vcmp.lt.s32.totalorder %v354_v48, 3  ;;  %v214_v25 = vor.u32 4788187, %v213_v7  ;;  %v357_v27 = vshrl.u32 %v1609_v26, %v356_v38 }
  0x43   :  { %vm374_vm8 = vcmp.lt.s32.totalorder %v354_v48, 2  ;;  %v382_v10 = vsel %vm376_vm6, %v369_v13, 920167782  ;;  %v378_v31 = vsel %vm376_vm6, %v366_v19, 2102212464  ;;  %v381_v33 = vsel %vm373_vm5, %v360_v15, %v363_v17 }
  0x44   :  { %v1450_v8 = vmin.u32 %v304_v22, %v1823_v14  ;;  %v386_v35 = vsel %vm376_vm6, %v372_v18, 1326507024  ;;  %v383_v36 = vsel %vm375_vm7, %v366_v19, %v382_v10  ;;  %v385_v37 = vsel %vm373_vm5, %v363_v17, %v366_v19 }
  0x45   :  { %v389_v39 = vshll.u32 %v349_v11, 8  ;;  %v115_v40 = vmul.f32 %v114_v23, %v112_v45  ;;  %v118_v42 = vsub.s32 4, %v1730_v53  ;;  %v217_v43 = vcvt.s32.f32 %v210_v21 }
  0x46   :  { %v306_v44 = vclz %v1450_v8  ;;  %v377_v38 = vsel %vm373_vm5, %v357_v27, %v360_v15  ;;  %v379_v24 = vsel %vm375_vm7, %v363_v17, %v378_v31  ;;  %v384_v46 = vsel %vm374_vm8, %v381_v33, %v383_v36 }
  0x47   :  { %v387_v62 = vsel %vm375_vm7, %v369_v13, %v386_v35  ;;  %v215_v47 = vand.u32 2147483647, %v214_v25  ;;  %v448_v51 = vshrl.u32 %v447_v20, 23  ;;  %v380_v57 = vsel %vm374_vm8, %v377_v38, %v379_v24 }
  0x48   :  { %v1451_v52 = vadd.s32 4294967294, %v306_v44  ;;  %v388_v54 = vsel %vm374_vm8, %v385_v37, %v387_v62  ;;  %v1842_v58 = vmul.u32.u64.low %v389_v39, %v384_v46  ;;  %v1843_v60 = vmul.u32.u64.high %v389_v39, %v384_v46, %v1842_v58 }
  0x49   :  { %v1838_v55 = vmul.u32.u64.low %v389_v39, %v388_v54  ;;  %v1839_v56 = vmul.u32.u64.high %v389_v39, %v388_v54, %v1838_v55  ;;  %vm34_vm10 = vcmp.lt.s32.totalorder %v1645_v0, 0  ;;  %v1457_v3 = vadd.s32 4294967169, %v448_v51 }
  0x4a   :  { %vm1452_vm9 = vcmp.lt.s32.totalorder %v1451_v52, 0  ;;  %v116_v6 = vxor.u32 2147483648, %v115_v40  ;;  %v119_v23 = vsel %vm34_vm10, %v118_v42, %v1730_v53  ;;  %v218_v7 = vmul.f32 %v217_v43, %v215_v47 }
  0x4b   :  { %v309_v63 = vsel %vm1452_vm9, 0, %v1451_v52  ;;  %v396_v13 = vmul.u32 %v389_v39, %v380_v57  ;;  %vm398_vm11 = vc.u32 %v1839_v56, %v1842_v58  ;;  %v454_v48 = vadd.s32 1, %v1457_v3 }
  0x4c   :  { %v314_v11 = vsub.s32 4294967266, %v309_v63  ;;  %vm1854_vm12 = vcmp.le.f32.partialorder %v32_v2, 0.7853982  ;;  %vm137_vm13 = vcmp.lt.s32.totalorder %v1650_v1, 0  ;;  %v399_v17 = vadd.s32 1, %v1843_v60 }
  0x4d   :  { %v1862_v53 = vsel %vm1854_vm12, 0, %v119_v23  ;;  %v294_v18 = vadd.s32 %v1790_v16, %v1785_v12  ;;  %v444_v19 = vand.u32 2147483647, %v1818_v59  ;;  %vm455_vm14 = vcmp.gt.s32.totalorder %v454_v48, 0 }
  0x4e   :  { %v117_v2 = vsel %vm34_vm10, %v116_v6, %v115_v40  ;;  %v310_v20 = vsub.s32 32, %v309_v63  ;;  %v400_v45 = vsel %vm398_vm11, %v399_v17, %v1843_v60  ;;  %v456_v21 = vsel %vm455_vm14, %v454_v48, 0 }
  0x4f   :  { %v219_v22 = vxor.u32 2147483648, %v218_v7  ;;  %v315_v25 = vadd.s32 127, %v314_v11  ;;  %v401_v27 = vadd.s32 %v400_v45, %v396_v13  ;;  %v458_v10 = vand.u32 31, %v456_v21 }
  0x50   :  { %v1871_v8 = vand.u32 3, %v1862_v53  ;;  %vm1875_vm15 = vcmp.le.f32.partialorder %v135_v5, 0.7853982  ;;  %v221_v16 = vsub.s32 4, %v1765_v29  ;;  %v120_v35 = vsel %vm1854_vm12, %v1645_v0, %v117_v2 }
  0x51   :  { %v402_v31 = vadd.s32 536870912, %v401_v27  ;;  %v459_v33 = vsub.s32 32, %v458_v10  ;;  %v311_v36 = vshll.u32 %v1823_v14, %v309_v63  ;;  %v312_v37 = vshrl.u32 %v294_v18, %v310_v20 }
  0x52   :  { %v451_v39 = vand.u32 8388607, %v444_v19  ;;  %v220_v5 = vsel %vm137_vm13, %v219_v22, %v218_v7  ;;  %v316_v40 = vshll.u32 %v315_v25, 23  ;;  %v457_v43 = vshrl.u32 %v456_v21, 5 }
  0x53   :  { %v1888_v42 = vshrl.u32 %v402_v31, 30  ;;  %v461_v44 = vshll.u32 %v1609_v26, %v458_v10  ;;  %v462_v38 = vshrl.u32 %v1610_v28, %v459_v33  ;;  %v464_v24 = vshll.u32 %v1610_v28, %v458_v10 }
  0x54   :  { %v465_v46 = vshrl.u32 %v1611_v30, %v459_v33  ;;  %v467_v62 = vshll.u32 %v1611_v30, %v458_v10  ;;  %v468_v47 = vshrl.u32 %v1612_v32, %v459_v33  ;;  %v470_v52 = vshll.u32 %v1612_v32, %v458_v10 }
  0x55   :  { %v404_v14 = vshll.u32 %v1888_v42, 30  ;;  %1589 = vcosq.f32 %v120_v35  ;;  %v223_v54 = vsel %vm1875_vm15, %v1650_v1, %v220_v5  ;;  %v313_v51 = vor.u32 %v312_v37, %v311_v36 }
  0x56   :  { %v471_v55 = vshrl.u32 %v1613_v34, %v459_v33  ;;  %v317_v57 = vor.u32 4788187, %v316_v40  ;;  %v473_v60 = vshll.u32 %v1613_v34, %v458_v10  ;;  %v474_v63 = vshrl.u32 %v1614_v41, %v459_v33 }
  0x57   :  { %v1902_v28 = vsub.s32 %v401_v27, %v404_v14  ;;  %1591 = vsinq.f32 %v120_v35  ;;  %v452_v30 = vor.u32 8388608, %v451_v39  ;;  %v463_v3 = vor.u32 %v462_v38, %v461_v44 }
  0x58   :  { %v466_v6 = vor.u32 %v465_v46, %v464_v24  ;;  %v469_v23 = vor.u32 %v468_v47, %v467_v62  ;;  %v472_v7 = vor.u32 %v471_v55, %v470_v52  ;;  %vm476_vm0 = vcmp.lt.s32.totalorder %v457_v43, 1 }
  0x59   :  { %v407_v32 = vsub.s32 0, %v1902_v28  ;;  %1593 = vcosq.f32 %v223_v54  ;;  %v460_v11 = vshrl.u32 %v1609_v26, %v459_v33  ;;  %v475_v13 = vor.u32 %v474_v63, %v473_v60 }
  0x5a   :  { %vm479_vm1 = vcmp.lt.s32.totalorder %v457_v43, 4  ;;  %v318_v48 = vand.u32 2147483647, %v317_v57  ;;  %v320_v15 = vcvt.s32.f32 %v313_v51  ;;  %vm478_vm2 = vcmp.lt.s32.totalorder %v457_v43, 3 }
  0x5b   :  { %v1454_v34 = vmin.u32 %v407_v32, %v1902_v28  ;;  %vm240_vm3 = vcmp.lt.s32.totalorder %v1657_v4, 0  ;;  %vm477_vm4 = vcmp.lt.s32.totalorder %v457_v43, 2  ;;  %v481_v41 = vsel %vm479_vm1, %v469_v23, 2102212464 }
  0x5c   :  { %v484_v17 = vsel %vm476_vm0, %v463_v3, %v466_v6  ;;  %v492_v18 = vshll.u32 %v452_v30, 8  ;;  %v485_v20 = vsel %vm479_vm1, %v472_v7, 920167782  ;;  %v488_v26 = vsel %vm476_vm0, %v466_v6, %v469_v23 }
  0x5d   :  { %v409_v2 = vclz %v1454_v34  ;;  %v640_v45 = vadd.s32 3, %v1862_v53  ;;  %v480_v21 = vsel %vm476_vm0, %v460_v11, %v463_v3  ;;  %v482_v22 = vsel %vm478_vm2, %v466_v6, %v481_v41 }
  0x5e   :  { %v486_v25 = vsel %vm478_vm2, %v469_v23, %v485_v20  ;;  %v489_v27 = vsel %vm479_vm1, %v475_v13, 1326507024  ;;  %v321_v10 = vmul.f32 %v320_v15, %v318_v48  ;;  %v397_v37 = vadd.s32 %v1842_v58, %v1839_v56 }
  0x5f   :  { %v1455_v31 = vadd.s32 4294967294, %v409_v2  ;;  %v487_v33 = vsel %vm477_vm4, %v484_v17, %v486_v25  ;;  %v490_v35 = vsel %vm478_vm2, %v472_v7, %v489_v27  ;;  %v1590_v36 = vpop.eup %1589  ;;  %v483_v40 = vsel %vm477_vm4, %v480_v21, %v482_v22 }
  0x60   :  { %v491_v53 = vsel %vm477_vm4, %v488_v26, %v490_v35  ;;  %v1924_v39 = vmul.u32.u64.low %v492_v18, %v487_v33  ;;  %v1925_v5 = vmul.u32.u64.high %v492_v18, %v487_v33, %v1924_v39  ;;  %v222_v46 = vsel %vm137_vm13, %v221_v16, %v1765_v29 }
  0x61   :  { %vm1456_vm5 = vcmp.lt.s32.totalorder %v1455_v31, 0  ;;  %v1929_v44 = vmul.u32.u64.low %v492_v18, %v491_v53  ;;  %v1930_v38 = vmul.u32.u64.high %v492_v18, %v491_v53, %v1929_v44  ;;  %v1592_v24 = vpop.eup %1591  ;;  %1595 = vsinq.f32 %v223_v54 }
  0x62   :  { %vm1939_vm6 = vcmp.le.f32.partialorder %v238_v49, 0.7853982  ;;  %v412_v58 = vsel %vm1456_vm5, 0, %v1455_v31  ;;  %v322_v43 = vxor.u32 2147483648, %v321_v10  ;;  %vm127_vm7 = vcmp.eq.s32.totalorder %v1871_v8, 0 }
  0x63   :  { %v413_v14 = vsub.s32 32, %v412_v58  ;;  %v414_v62 = vshll.u32 %v1902_v28, %v412_v58  ;;  %v417_v47 = vsub.s32 4294967266, %v412_v58  ;;  %v1944_v52 = vpop.eup %1593  ;;  %vm130_vm8 = vcmp.eq.s32.totalorder %v1871_v8, 2 }
  0x64   :  { %v499_v29 = vmul.u32 %v492_v18, %v483_v40  ;;  %v502_v16 = vadd.s32 1, %v1925_v5  ;;  %v224_v49 = vsel %vm1875_vm15, 0, %v222_v46  ;;  %v641_v55 = vand.u32 3, %v640_v45  ;;  %v1972_v18 = vld [vmem:[%s2082_s1] sm:$0xff]  }
  0x65   :  { %v415_v54 = vshrl.u32 %v397_v37, %v413_v14  ;;  %v418_v51 = vadd.s32 127, %v417_v47  ;;  %v128_v57 = vxor.u32 2147483648, %v1592_v24  ;;  %v131_v60 = vxor.u32 2147483648, %v1590_v36 }
  0x66   :  { %v324_v28 = vsub.s32 4, %v1806_v50  ;;  %vm501_vm9 = vc.u32 %v1930_v38, %v1924_v39  ;;  %v323_v63 = vsel %vm240_vm3, %v322_v43, %v321_v10  ;;  %vm126_vm10 = vcmp.lt.s32.totalorder %v1871_v8, 2 }
  0x67   :  { %v416_v30 = vor.u32 %v415_v54, %v414_v62  ;;  %v419_v3 = vshll.u32 %v418_v51, 23  ;;  %v503_v6 = vsel %vm501_vm9, %v502_v16, %v1925_v5  ;;  %v228_v12 = vand.u32 3, %v224_v49 }
  0x68   :  { %v504_v32 = vadd.s32 %v503_v6, %v499_v29  ;;  %vm643_vm11 = vcmp.eq.s32.totalorder %v641_v55, 0  ;;  %vm646_vm12 = vcmp.eq.s32.totalorder %v641_v55, 2  ;;  %v129_v11 = vsel %vm127_vm7, %v1590_v36, %v128_v57 }
  0x69   :  { %v420_v23 = vor.u32 4788187, %v419_v3  ;;  %v423_v7 = vcvt.s32.f32 %v416_v30  ;;  %v132_v13 = vsel %vm130_vm8, %v131_v60, %v1592_v24  ;;  %v326_v48 = vsel %vm1939_vm6, %v1657_v4, %v323_v63 }
  0x6a   :  { %v505_v15 = vadd.s32 536870912, %v504_v32  ;;  %vm124_vm13 = vweird.f32 %v1645_v0  ;;  %v325_v34 = vsel %vm240_vm3, %v324_v28, %v1806_v50  ;;  %v744_v17 = vadd.s32 3, %v224_v49 }
  0x6b   :  { %v421_v41 = vand.u32 2147483647, %v420_v23  ;;  %v1596_v2 = vpop.eup %1595  ;;  %vm642_vm14 = vcmp.lt.s32.totalorder %v641_v55, 2  ;;  %v645_v26 = vsel %vm643_vm11, %v1590_v36, %v128_v57  ;;  %v648_v45 = vsel %vm646_vm12, %v131_v60, %v1592_v24 }
  0x6c   :  { %v1974_v20 = vshrl.u32 %v505_v15, 30  ;;  %v133_v21 = vsel %vm126_vm10, %v129_v11, %v132_v13  ;;  %vm230_vm15 = vcmp.eq.s32.totalorder %v228_v12, 0  ;;  %1597 = vcosq.f32 %v326_v48 }
  0x6d   :  { %v424_v22 = vmul.f32 %v423_v7, %v421_v41  ;;  %vm233_vm0 = vcmp.eq.s32.totalorder %v228_v12, 2  ;;  %1599 = vsinq.f32 %v326_v48  ;;  %vm1166_vm1 = vcmask 261120  }
  0x6e   :  { %v507_v50 = vshll.u32 %v1974_v20, 30  ;;  %v231_v25 = vxor.u32 2147483648, %v1596_v2  ;;  %v234_v27 = vxor.u32 2147483648, %v1944_v52  ;;  %v327_v10 = vsel %vm1939_vm6, 0, %v325_v34  ;;  %1513 = vmatprep.mubr.msk.bf16.mxu0 %vm1166_vm1, %v1972_v18 }
  0x6f   :  { %v649_v31 = vsel %vm642_vm14, %v645_v26, %v648_v45  ;;  %v134_v8 = vsel %vm124_vm13, nan, %v133_v21  ;;  %v425_v33 = vxor.u32 2147483648, %v424_v22  ;;  %v745_v36 = vand.u32 3, %v744_v17 }
  0x70   :  { %v508_v35 = vsub.s32 %v504_v32, %v507_v50  ;;  %vm1988_vm2 = vcmp.le.f32.partialorder %v341_v9, 0.7853982  ;;  %vm343_vm3 = vcmp.lt.s32.totalorder %v1743_v61, 0  ;;  %vm229_vm4 = vcmp.lt.s32.totalorder %v228_v12, 2 }
  0x71   :  { %v1993_v53 = vand.u32 3, %v327_v10  ;;  %v650_v40 = vsel %vm124_vm13, nan, %v649_v31  ;;  %v232_v44 = vsel %vm230_vm15, %v1944_v52, %v231_v25  ;;  %v235_v24 = vsel %vm233_vm0, %v234_v27, %v1596_v2 }
  0x72   :  { %v510_v5 = vsub.s32 0, %v508_v35  ;;  %v848_v46 = vadd.s32 3, %v327_v10  ;;  %v1067_v56 = vmul.f32 0.70710677, %v134_v8  ;;  %v426_v9 = vsel %vm343_vm3, %v425_v33, %v424_v22 }
  0x73   :  { %v427_v58 = vsub.s32 4, %v1888_v42  ;;  %vm747_vm5 = vcmp.eq.s32.totalorder %v745_v36, 0  ;;  %vm750_vm6 = vcmp.eq.s32.totalorder %v745_v36, 2  ;;  %v1068_v14 = vmul.f32 0.0, %v650_v40 }
  0x74   :  { %v1458_v43 = vmin.u32 %v510_v5, %v508_v35  ;;  %v1070_v62 = vmul.f32 0.0, %v134_v8  ;;  %v1071_v47 = vmul.f32 0.70710677, %v650_v40  ;;  %vm227_vm7 = vweird.f32 %v1650_v1 }
  0x75   :  { %v236_v16 = vsel %vm229_vm4, %v232_v44, %v235_v24  ;;  %vm333_vm8 = vcmp.eq.s32.totalorder %v1993_v53, 0  ;;  %vm336_vm9 = vcmp.eq.s32.totalorder %v1993_v53, 2  ;;  %v429_v49 = vsel %vm1988_vm2, %v1743_v61, %v426_v9 }
  0x76   :  { %v512_v0 = vclz %v1458_v43  ;;  %v1598_v29 = vpop.eup %1597  ;;  %vm332_vm10 = vcmp.lt.s32.totalorder %v1993_v53, 2  ;;  %vm746_vm11 = vcmp.lt.s32.totalorder %v745_v36, 2  ;;  %v749_v55 = vsel %vm747_vm5, %v1944_v52, %v231_v25 }
  0x77   :  { %v1600_v54 = vpop.eup %1599  ;;  %v752_v57 = vsel %vm750_vm6, %v234_v27, %v1596_v2  ;;  %v428_v60 = vsel %vm343_vm3, %v427_v58, %v1888_v42  ;;  %v849_v28 = vand.u32 3, %v848_v46  ;;  %v1069_v63 = vsub.f32 %v1067_v56, %v1068_v14 }
  0x78   :  { %v1459_v51 = vadd.s32 4294967294, %v512_v0  ;;  %v1072_v30 = vadd.f32 %v1071_v47, %v1070_v62  ;;  %v337_v3 = vxor.u32 2147483648, %v1598_v29  ;;  %1601 = vcosq.f32 %v429_v49 }
  0x79   :  { %v500_v6 = vadd.s32 %v1924_v39, %v1930_v38  ;;  %v334_v12 = vxor.u32 2147483648, %v1600_v54  ;;  %1603 = vsinq.f32 %v429_v49  ;;  %v753_v23 = vsel %vm746_vm11, %v749_v55, %v752_v57 }
  0x7a   :  { %vm1460_vm12 = vcmp.lt.s32.totalorder %v1459_v51, 0  ;;  %v430_v52 = vsel %vm1988_vm2, 0, %v428_v60  ;;  %vm851_vm13 = vcmp.eq.s32.totalorder %v849_v28, 0  ;;  %vm854_vm14 = vcmp.eq.s32.totalorder %v849_v28, 2 }
  0x7b   :  { %v515_v32 = vsel %vm1460_vm12, 0, %v1459_v51  ;;  %v1073_v42 = vrot.slane %v1069_v63, 4  ;;  %v1074_v48 = vrot.slane %v1072_v30, 4  ;;  %v237_v15 = vsel %vm227_vm7, nan, %v236_v16 }
  0x7c   :  { %v516_v7 = vsub.s32 32, %v515_v32  ;;  %v517_v11 = vshll.u32 %v508_v35, %v515_v32  ;;  %v520_v13 = vsub.s32 4294967266, %v515_v32  ;;  %v754_v38 = vsel %vm227_vm7, nan, %v753_v23 }
  0x7d   :  { %v335_v41 = vsel %vm333_vm8, %v1598_v29, %v334_v12  ;;  %v338_v17 = vsel %vm336_vm9, %v337_v3, %v1600_v54  ;;  %vm850_vm15 = vcmp.lt.s32.totalorder %v849_v28, 2  ;;  %v952_v2 = vadd.s32 3, %v430_v52 }
  0x7e   :  { %v518_v34 = vshrl.u32 %v500_v6, %v516_v7  ;;  %v521_v39 = vadd.s32 127, %v520_v13  ;;  %v853_v21 = vsel %vm851_vm13, %v1598_v29, %v334_v12  ;;  %v856_v22 = vsel %vm854_vm14, %v337_v3, %v1600_v54 }
  0x7f   :  { %v1075_v50 = vmul.f32 %v1069_v63, %v237_v15  ;;  %v1076_v25 = vmul.f32 %v1073_v42, %v754_v38  ;;  %v1078_v27 = vmul.f32 %v1072_v30, %v237_v15  ;;  %v1079_v10 = vmul.f32 %v1074_v48, %v754_v38 }
  0x80   :  { %v519_v26 = vor.u32 %v518_v34, %v517_v11  ;;  %v522_v45 = vshll.u32 %v521_v39, 23  ;;  %vm330_vm0 = vweird.f32 %v1657_v4  ;;  %v339_v8 = vsel %vm332_vm10, %v335_v41, %v338_v17 }
  0x81   :  { %v434_v33 = vand.u32 3, %v430_v52  ;;  %v857_v35 = vsel %vm850_vm15, %v853_v21, %v856_v22  ;;  %v953_v36 = vand.u32 3, %v952_v2  ;;  %v530_v40 = vsub.s32 4, %v1974_v20 }
  0x82   :  { %v523_v1 = vor.u32 4788187, %v522_v45  ;;  %v526_v31 = vcvt.s32.f32 %v519_v26  ;;  %v1602_v37 = vpop.eup %1601  ;;  %vm446_vm2 = vcmp.lt.s32.totalorder %v1818_v59, 0  ;;  %v1077_v24 = vadd.f32 %v1076_v25, %v1075_v50 }
  0x83   :  { %v1604_v44 = vpop.eup %1603  ;;  %v1080_v46 = vadd.f32 %v1079_v10, %v1078_v27  ;;  %v340_v56 = vsel %vm330_vm0, nan, %v339_v8  ;;  %vm2038_vm3 = vcmp.le.f32.partialorder %v444_v19, 0.7853982  ;;  %v858_v58 = vsel %vm330_vm0, nan, %v857_v35 }
  0x84   :  { %v524_v5 = vand.u32 2147483647, %v523_v1  ;;  %vm436_vm4 = vcmp.eq.s32.totalorder %v434_v33, 0  ;;  %vm439_vm5 = vcmp.eq.s32.totalorder %v434_v33, 2  ;;  %v440_v43 = vxor.u32 2147483648, %v1602_v37 }
  0x85   :  { %vm955_vm6 = vcmp.eq.s32.totalorder %v953_v36, 0  ;;  %v437_v14 = vxor.u32 2147483648, %v1604_v44  ;;  %v531_v47 = vsel %vm446_vm2, %v530_v40, %v1974_v20  ;;  %vm958_vm7 = vcmp.eq.s32.totalorder %v953_v36, 2 }
  0x86   :  { %v527_v9 = vmul.f32 %v526_v31, %v524_v5  ;;  %v1081_v0 = vmul.f32 %v1077_v24, %v340_v56  ;;  %v1082_v19 = vmul.f32 %v1080_v46, %v858_v58  ;;  %v1084_v29 = vmul.f32 %v1080_v46, %v340_v56 }
  0x87   :  { %v1085_v16 = vmul.f32 %v1077_v24, %v858_v58  ;;  %vm435_vm8 = vcmp.lt.s32.totalorder %v434_v33, 2  ;;  %v441_v49 = vsel %vm439_vm5, %v440_v43, %v1604_v44  ;;  %v533_v51 = vsel %vm2038_vm3, 0, %v531_v47 }
  0x88   :  { %v528_v62 = vxor.u32 2147483648, %v527_v9  ;;  %vm954_vm9 = vcmp.lt.s32.totalorder %v953_v36, 2  ;;  %v438_v20 = vsel %vm436_vm4, %v1602_v37, %v437_v14  ;;  %v957_v55 = vsel %vm955_vm6, %v1602_v37, %v437_v14 }
  0x89   :  { %v960_v57 = vsel %vm958_vm7, %v440_v43, %v1604_v44  ;;  %v1083_v60 = vsub.f32 %v1081_v0, %v1082_v19  ;;  %v1086_v28 = vadd.f32 %v1085_v16, %v1084_v29  ;;  %v1056_v63 = vadd.s32 3, %v533_v51 }
  0x8a   :  { %v529_v4 = vsel %vm446_vm2, %v528_v62, %v527_v9  ;;  %vm433_vm10 = vweird.f32 %v1743_v61  ;;  %v442_v30 = vsel %vm435_vm8, %v438_v20, %v441_v49  ;;  %v961_v3 = vsel %vm954_vm9, %v957_v55, %v960_v57 }
  0x8b   :  { %v532_v54 = vsel %vm2038_vm3, %v1818_v59, %v529_v4  ;;  %v1087_v6 = vrot.slane %v1083_v60, 4  ;;  %v1088_v12 = vrot.slane %v1086_v28, 4  ;;  %v443_v32 = vsel %vm433_vm10, nan, %v442_v30 }
  0x8c   :  { %1605 = vcosq.f32 %v532_v54  ;;  %v537_v23 = vand.u32 3, %v533_v51  ;;  %v962_v52 = vsel %vm433_vm10, nan, %v961_v3  ;;  %v1057_v7 = vand.u32 3, %v1056_v63 }
  0x8d   :  { %1607 = vsinq.f32 %v532_v54  ;;  %v1089_v11 = vmul.f32 %v1083_v60, %v443_v32  ;;  %v1090_v13 = vmul.f32 %v1087_v6, %v962_v52  ;;  %v1092_v42 = vmul.f32 %v1086_v28, %v443_v32 }
  0x8e   :  { %v1093_v48 = vmul.f32 %v1088_v12, %v962_v52  ;;  %vm542_vm11 = vcmp.eq.s32.totalorder %v537_v23, 2  ;;  %vm1062_vm12 = vcmp.eq.s32.totalorder %v1057_v7, 2  ;;  %vm539_vm13 = vcmp.eq.s32.totalorder %v537_v23, 0  ;;  %v1587_v52 = vld [vmem:[%s2083_s2] sm:$0xff]  }
  0x8f   :  { %vm1059_vm14 = vcmp.eq.s32.totalorder %v1057_v7, 0  ;;  %vm536_vm15 = vweird.f32 %v1818_v59  ;;  %vm538_vm0 = vcmp.lt.s32.totalorder %v537_v23, 2  ;;  %vm1058_vm2 = vcmp.lt.s32.totalorder %v1057_v7, 2  ;;  %v1586_v23 = vld [vmem:[%s2082_s1 + $0x8] sm:$0xff]  }
  0x90   :  { %v1091_v17 = vadd.f32 %v1090_v13, %v1089_v11  ;;  %v1094_v2 = vadd.f32 %v1093_v48, %v1092_v42  ;;  %v1588_v7 = vld [vmem:[%s2083_s2 + $0x8] sm:$0xff]   ;;  %vm1616_vm3 = vmmov 0  }
  0x96   :  { %v1606_v15 = vpop.eup %1605 }
  0x97   :  { %v1608_v34 = vpop.eup %1607  ;;  %v543_v39 = vxor.u32 2147483648, %v1606_v15 }
  0x98   :  { %v540_v61 = vxor.u32 2147483648, %v1608_v34 }
  0x99   :  { %v544_v38 = vsel %vm542_vm11, %v543_v39, %v1608_v34  ;;  %v1064_v41 = vsel %vm1062_vm12, %v543_v39, %v1608_v34 }
  0x9a   :  { %v541_v26 = vsel %vm539_vm13, %v1606_v15, %v540_v61  ;;  %v1061_v45 = vsel %vm1059_vm14, %v1606_v15, %v540_v61 }
  0x9b   :  { %v545_v21 = vsel %vm538_vm0, %v541_v26, %v544_v38  ;;  %v1065_v22 = vsel %vm1058_vm2, %v1061_v45, %v1064_v41 }
  0x9c   :  { %v546_v50 = vsel %vm536_vm15, nan, %v545_v21  ;;  %v1066_v25 = vsel %vm536_vm15, nan, %v1065_v22 }
  0x9d   :  { %v1095_v27 = vmul.f32 %v1091_v17, %v546_v50  ;;  %v1096_v10 = vmul.f32 %v1094_v2, %v1066_v25  ;;  %v1098_v1 = vmul.f32 %v1094_v2, %v546_v50  ;;  %v1099_v31 = vmul.f32 %v1091_v17, %v1066_v25  ;;  %v26_v50 = vld [vmem:[%s2084_s3] sm:$0xf] }
  0x9f   :  { %v1097_v8 = vsub.f32 %v1095_v27, %v1096_v10  ;;  %v1100_v33 = vadd.f32 %v1099_v31, %v1098_v1 }
  0xa1   :  { %v1102_v59 = vrot.slane %v1097_v8, 6  ;;  %v1107_v35 = vrot.slane %v1100_v33, 6 }
  0xa3   :  { %v1110_v36 = vmul.f32 %v1102_v59, %v1097_v8  ;;  %v1111_v37 = vmul.f32 %v1107_v35, %v1100_v33  ;;  %v1113_v5 = vmul.f32 %v1107_v35, %v1097_v8  ;;  %v1114_v40 = vmul.f32 %v1102_v59, %v1100_v33 }
  0xa5   :  { %v1112_v44 = vsub.f32 %v1110_v36, %v1111_v37  ;;  %v1115_v24 = vadd.f32 %v1114_v40, %v1113_v5 }
  0xa7   :  { %v1117_v46 = vrot.slane %v1112_v44, 7  ;;  %v1122_v56 = vrot.slane %v1115_v24, 7  ;;  %v1125_v53 = vrot.slane %v1112_v44, 5  ;;  %v1129_v9 = vrot.slane %v1115_v24, 5 }
  0xa9   :  { %v1132_v58 = vmul.f32 %v1117_v46, %v1112_v44  ;;  %v1133_v43 = vmul.f32 %v1122_v56, %v1115_v24  ;;  %v1135_v14 = vmul.f32 %v1125_v53, %v1112_v44  ;;  %v1136_v62 = vmul.f32 %v1129_v9, %v1115_v24 }
  0xaa   :  { %v1138_v47 = vmul.f32 %v1122_v56, %v1112_v44  ;;  %v1139_v0 = vmul.f32 %v1117_v46, %v1115_v24  ;;  %v1141_v19 = vmul.f32 %v1129_v9, %v1112_v44  ;;  %v1142_v29 = vmul.f32 %v1125_v53, %v1115_v24 }
  0xab   :  { %v1134_v16 = vsub.f32 %v1132_v58, %v1133_v43  ;;  %v1137_v4 = vsub.f32 %v1135_v14, %v1136_v62 }
  0xac   :  { %v1140_v49 = vadd.f32 %v1139_v0, %v1138_v47  ;;  %v1143_v54 = vadd.f32 %v1142_v29, %v1141_v19 }
  0xad   :  { %v1144_v51 = vpack.c.bf16 %v1137_v4, %v1134_v16 }
  0xae   :  { %v1145_v20 = vpack.c.bf16 %v1143_v54, %v1140_v49 }
  0xaf   :  { %v1146_v55 = vunpack.c.l.bf16 %v1144_v51  ;;  %v1147_v57 = vunpack.c.h.bf16 %v1144_v51 }
  0xb0   :  { %v1148_v60 = vunpack.c.l.bf16 %v1145_v20  ;;  %v1149_v28 = vunpack.c.h.bf16 %v1145_v20 }
  0xb1   :  { %v1150_v63 = vsub.f32 %v1134_v16, %v1146_v55  ;;  %v1151_v30 = vsub.f32 %v1137_v4, %v1147_v57 }
  0xb2   :  { %v1152_v3 = vsub.f32 %v1140_v49, %v1148_v60  ;;  %v1153_v6 = vsub.f32 %v1143_v54, %v1149_v28 }
  0xb3   :  { %v1154_v12 = vpack.c.bf16 %v1151_v30, %v1150_v63 }
  0xb4   :  { %v1155_v32 = vpack.c.bf16 %v1153_v6, %v1152_v3 }
  0xb5   :  { %1509 = vmatprep.subr.bf16.mxu0 %v1154_v12 }
  0xb6   :  { %1510 = vmatpush3.bf16.msra.mxu0 %v1154_v12 }
  0xb7   :  { %1511 = vmatprep.subr.bf16.mxu0 %v1155_v32 }
  0xba   :  { %1512 = vmatpush3.bf16.msra.mxu0 %v1155_v32 }
  0xbb   :  { %1517 = vmatprep.subr.bf16.mxu0 %v1144_v51 }
  0xbd   :  { %1514 = vmatmul.mubr.msk.bf16.vlgmr.msra.gmra.mrb[0].mxu0 %vm1166_vm1, %v1586_v23 }
  0xbe   :  { %1518 = vmatpush3.bf16.msra.mxu0 %v1144_v51  ;;  %1521 = vmatprep.mubr.msk.bf16.mxu0 %vm1166_vm1, %v1972_v18  ;;  %v1615_v18 = vmov 0.0  }
  0xbf   :  { %1519 = vmatprep.subr.bf16.mxu0 %v1145_v20  ;;  %1533 = vmatprep.subr.bf16.mxu1 %v1615_v18 }
  0xc0   :  { %1535 = vmatprep.mubr.msk.bf16.mxu1 %vm1616_vm3, %v1615_v18 }
  0xc2   :  { %1520 = vmatpush3.bf16.msra.mxu0 %v1145_v20 }
  0xc3   :  { %1525 = vmatprep.subr.bf16.mxu0 %v1144_v51 }
  0xc9   :  { %1522 = vmatmul.mubr.msk.bf16.vlgmr.msra.gmra.mrb[0].mxu0 %vm1166_vm1, %v1586_v23 }
  0xca   :  { %1526 = vmatpush3.bf16.msra.mxu0 %v1144_v51  ;;  %1529 = vmatprep.mubr.msk.bf16.mxu0 %vm1166_vm1, %v1587_v52 }
  0xcb   :  { %1527 = vmatprep.subr.bf16.mxu0 %v1145_v20 }
  0xce   :  { %1528 = vmatpush3.bf16.msra.mxu0 %v1145_v20 }
  0xd5   :  { %1530 = vmatmul.mubr.msk.bf16.vlgmr.msra.gmra.mrb[0].mxu0 %vm1166_vm1, %v1588_v7  ;;  %vm1352_vm1 = vcmask 130048  }
 0x1a8   :  { %v1531_v11 = vpop.f32.mrb[0].mxu0 }
 0x1a9   :  { %v1342_v13 = vmul.f32 %v1531_v11, %v1531_v11  ;;  %v1321_v42 = vpop.f32.mrb[1].mxu0 }
 0x1aa   :  { %v1340_v48 = vmul.f32 %v1321_v42, %v1321_v42  ;;  %v1532_v15 = vpop.f32.mrb[2].mxu0 }
 0x1ab   :  { %v1343_v34 = vmul.f32 %v1532_v15, %v1532_v15  ;;  %v1324_v39 = vpop.f32.mrb[3].mxu0 }
 0x1ac   :  { %v1344_v61 = vadd.f32 %v1342_v13, %v1340_v48  ;;  %v1341_v38 = vmul.f32 %v1324_v39, %v1324_v39 }
 0x1ae   :  { %v1345_v41 = vadd.f32 %v1343_v34, %v1341_v38 }
 0x1b0   :  { %v1346_v17 = vpack.c.bf16 %v1345_v41, %v1344_v61 }
 0x1b2   :  { %v1347_v2 = vunpack.c.l.bf16 %v1346_v17  ;;  %v1348_v26 = vunpack.c.h.bf16 %v1346_v17 }
 0x1b4   :  { %v1349_v45 = vsub.f32 %v1344_v61, %v1347_v2  ;;  %v1350_v21 = vsub.f32 %v1345_v41, %v1348_v26 }
 0x1b6   :  { %v1351_v22 = vpack.c.bf16 %v1350_v21, %v1349_v45 }
 0x1b8   :  { %1534 = vmatpush3.bf16.msra.mxu1 %v1351_v22 }
 0x1b9   :  { %1539 = vmatprep.subr.bf16.mxu1 %v1615_v18 }
 0x1bb   :  { %1536 = vmatmul.mubr.msk.bf16.vlgmr.msra.gmra.mrb[0].mxu1 %vm1352_vm1, %v26_v50 }
 0x1bc   :  { %1540 = vmatpush3.bf16.msra.mxu1 %v1346_v17  ;;  %1541 = vmatprep.mubr.msk.bf16.mxu1 %vm1616_vm3, %v1615_v18 }
 0x1c7   :  { %1542 = vmatmul.mubr.msk.bf16.vlgmr.msra.gmra.mrb[0].mxu1 %vm1352_vm1, %v26_v50 }
 0x29a   :  { %v1430_v25 = vpop.f32.mrb[0].mxu1 }
 0x29b   :  { %1436 = vst [vmem:[%s2085_s4] sm:$0xff] %v1430_v25  ;;  %v1543_v27 = vpop.f32.mrb[1].mxu1 }
 0x29c   :  { %v1433_v10 = vpop.f32.mrb[2].mxu1 }
 0x29d   :  { %v1544_v1 = vpop.f32.mrb[3].mxu1 }

</bundles_post_ra>
